<compile_context>
chip_gen: v5e
topology: v5e:2x2
jax: 0.10.0
libtpu: 0.0.40
codegen_flags: <defaults>
</compile_context>

<pallas_src>
import functools

import jax
import jax.numpy as jnp
from jax.experimental import pallas as pl
from jax.experimental.pallas import tpu as pltpu


# ---------------------------------------------------------------------------
# Fused single-pass kernel: whole image resident in VMEM.
# ---------------------------------------------------------------------------
def _se_fused_kernel(x_ref, w1_ref, b1_ref, w2_ref, b2_ref, o_ref, *,
                     inv_count, chunk):
    """Grid = (N,).  One image per grid step, auto double-buffered by Pallas.

    x_ref  : (1, C, S)   whole image: channels on sublanes, spatial on lanes
    w1_ref : (Fc, C)     fc1 weights, native PyTorch (out, in) layout
    b1_ref : (Fc, 1)
    w2_ref : (C, Fc)     fc2 weights
    b2_ref : (C, 1)
    o_ref  : (1, C, S)
    """
    C, S = x_ref.shape[1], x_ref.shape[2]
    xv = x_ref.at[0]                      # (C, S) view (no load)
    ov = o_ref.at[0]                      # (C, S) view

    # ---- spatial sum: VPU adds of `chunk`-lane slices into a (C, chunk)
    #      partial sum; single cross-lane reduce at the end ----
    nfull = S // chunk
    rem = S - nfull * chunk
    if nfull > 0:
        def sum_body(i, a):
            off = pl.multiple_of(i * chunk, chunk)
            return a + xv[:, pl.ds(off, chunk)].astype(jnp.float32)
        acc = jax.lax.fori_loop(0, nfull, sum_body,
                                jnp.zeros((C, chunk), jnp.float32))
        total = jnp.sum(acc, axis=-1, keepdims=True)             # (C, 1)
    else:
        total = jnp.zeros((C, 1), jnp.float32)
    if rem > 0:
        total = total + jnp.sum(xv[:, nfull * chunk:].astype(jnp.float32),
                                axis=-1, keepdims=True)

    # ---- squeeze-excite FC chain; channels stay on sublanes (no relayout) ----
    mean = total * inv_count                                     # (C, 1)
    h = jnp.dot(w1_ref[...].astype(jnp.float32), mean,
                preferred_element_type=jnp.float32) + b1_ref[...].astype(jnp.float32)
    h = jnp.maximum(h, 0.0)        # relu_act=True (module default)
    # TODO(synk): Swish branch (relu_act=False) would use h * sigmoid(h) here.
    g = jnp.dot(w2_ref[...].astype(jnp.float32), h,
                preferred_element_type=jnp.float32) + b2_ref[...].astype(jnp.float32)
    gate = jax.nn.sigmoid(g)                                     # (C, 1)

    # ---- broadcast multiply from the already-resident VMEM copy ----
    if nfull > 0:
        def mul_body(i, carry):
            off = pl.multiple_of(i * chunk, chunk)
            blk = xv[:, pl.ds(off, chunk)].astype(jnp.float32)
            ov[:, pl.ds(off, chunk)] = (blk * gate).astype(o_ref.dtype)
            return carry
        jax.lax.fori_loop(0, nfull, mul_body, 0)
    if rem > 0:
        blk = xv[:, nfull * chunk:].astype(jnp.float32)
        ov[:, nfull * chunk:] = (blk * gate).astype(o_ref.dtype)


# ---------------------------------------------------------------------------
# Fallback pass 1: tiled global sum (cdiv grid, masked last tile).
# ---------------------------------------------------------------------------
def _se_pool_kernel(x_ref, psum_ref, acc_ref, *, S, chunk):
    """Grid = (N, ceil(S/TS)).

    x_ref    : (1, C, TS)   one spatial tile of one image
    psum_ref : (1, C, 1)    per-image spatial sum (written on the last tile)
    acc_ref  : (C, chunk)   f32 VPU partial sums, persist across the s axis
    """
    s = pl.program_id(1)
    C, TS = x_ref.shape[1], x_ref.shape[2]
    ragged = (S % TS) != 0

    @pl.when(s == 0)
    def _():
        acc_ref[...] = jnp.zeros_like(acc_ref)

    xv = x_ref.at[0]
    base = s * TS
    nchunks = TS // chunk          # chunk divides TS by construction

    def body(i, a):
        off = pl.multiple_of(i * chunk, chunk)
        blk = xv[:, pl.ds(off, chunk)].astype(jnp.float32)
        if ragged:   # mask lanes past S (garbage in the partial last tile)
            lane = jax.lax.broadcasted_iota(jnp.int32, (C, chunk), 1) + (base + off)
            blk = jnp.where(lane < S, blk, 0.0)
        return a + blk

    acc_ref[...] = jax.lax.fori_loop(0, nchunks, body, acc_ref[...])

    @pl.when(s == pl.num_programs(1) - 1)
    def _():
        psum_ref[...] = jnp.sum(acc_ref[...], axis=-1, keepdims=True)[None]


# ---------------------------------------------------------------------------
# Fallback pass 2: out = x * gate (lane-dense, fully parallel).
# ---------------------------------------------------------------------------
def _se_scale_kernel(gate_ref, x_ref, o_ref):
    """Grid = (N, ceil(S/TS)).  gate: (1, C, 1); x/o: (1, C, TS)."""
    o_ref[...] = (x_ref[...].astype(jnp.float32) * gate_ref[...]).astype(o_ref.dtype)


# ---------------------------------------------------------------------------
# Wrapper
# ---------------------------------------------------------------------------
def _choose_spatial_tile(S, C, itemsize, target_bytes):
    """Spatial tile for the two-pass path: multiple of 128 (or all of S when
    S < 128), sized around `target_bytes`/block.  The grid uses pl.cdiv, so the
    tile need not divide S (the last tile is masked)."""
    if S <= 128:
        return S
    ts = (target_bytes // max(1, C * itemsize)) // 128 * 128
    ts = max(128, min(ts, (S // 128) * 128))
    return ts


def se_forward(x, fc1_w, fc1_b, fc2_w, fc2_b, *,
               max_fused_slab_bytes=6 * 1024 * 1024,
               two_pass_tile_bytes=4 * 1024 * 1024):
    """PyTorch-equivalent SE forward (relu_act=True).

    x      : (N, C, T, H, W)
    fc1_w  : (Fc, C, 1, 1, 1)   fc1_b : (Fc,)
    fc2_w  : (C, Fc, 1, 1, 1)   fc2_b : (C,)
    """
    N, C, T, H, W = x.shape
    dim_fc = fc1_w.shape[0]
    S = T * H * W
    itemsize = jnp.dtype(x.dtype).itemsize

    # Native PyTorch (out, in) conv-1x1x1 layouts: channels stay on the sublane
    # axis through pool -> FC1 -> FC2 -> multiply (no relayouts anywhere).
    w1 = fc1_w[:, :, 0, 0, 0]              # (Fc, C)
    b1 = fc1_b.reshape(dim_fc, 1)
    w2 = fc2_w[:, :, 0, 0, 0]              # (C, Fc)
    b2 = fc2_b.reshape(C, 1)

    # Free reshape: merge contiguous (T, H, W) onto the lane axis.
    x3 = x.reshape(N, C, S)

    # 32 MiB scoped VMEM is <= physical VMEM on v5e / v6e / v7x.
    vmem_limit = 32 * 1024 * 1024

    slab_bytes = C * S * itemsize
    if slab_bytes <= max_fused_slab_bytes:
        # -------- fused single pass: 2x HBM traffic (read once, write once) ----
        chunk = 512 if C <= 512 else 128
        out3 = pl.pallas_call(
            functools.partial(_se_fused_kernel,
                              inv_count=1.0 / float(S), chunk=chunk),
            out_shape=jax.ShapeDtypeStruct((N, C, S), x.dtype),
            grid_spec=pltpu.PrefetchScalarGridSpec(
                num_scalar_prefetch=0,
                grid=(N,),
                in_specs=[
                    pl.BlockSpec((1, C, S), lambda n: (n, 0, 0)),
                    pl.BlockSpec((dim_fc, C), lambda n: (0, 0)),
                    pl.BlockSpec((dim_fc, 1), lambda n: (0, 0)),
                    pl.BlockSpec((C, dim_fc), lambda n: (0, 0)),
                    pl.BlockSpec((C, 1), lambda n: (0, 0)),
                ],
                out_specs=pl.BlockSpec((1, C, S), lambda n: (n, 0, 0)),
            ),
            compiler_params=pltpu.CompilerParams(
                dimension_semantics=("parallel",),
                vmem_limit_bytes=vmem_limit),
        )(x3, w1, b1, w2, b2)
        return out3.reshape(N, C, T, H, W)

    # -------- fallback two-pass path: image slab too big for VMEM ------------
    TS = _choose_spatial_tile(S, C, itemsize, two_pass_tile_bytes)
    n_s = pl.cdiv(S, TS)
    if TS % 512 == 0:
        chunk = 512
    elif TS % 128 == 0:
        chunk = 128
    else:
        chunk = TS

    pooled = pl.pallas_call(
        functools.partial(_se_pool_kernel, S=S, chunk=chunk),
        out_shape=jax.ShapeDtypeStruct((N, C, 1), jnp.float32),
        grid_spec=pltpu.PrefetchScalarGridSpec(
            num_scalar_prefetch=0,
            grid=(N, n_s),
            in_specs=[pl.BlockSpec((1, C, TS), lambda n, s: (n, 0, s))],
            out_specs=pl.BlockSpec((1, C, 1), lambda n, s: (n, 0, 0)),
            scratch_shapes=[pltpu.VMEM((C, chunk), jnp.float32)],
        ),
        compiler_params=pltpu.CompilerParams(
            dimension_semantics=("parallel", "arbitrary"),
            vmem_limit_bytes=vmem_limit),
    )(x3)

    # The two tiny FCs batched over all N images in plain XLA (M=N matmuls).
    mean = pooled[:, :, 0] * (1.0 / float(S))                           # (N, C)
    h = jnp.maximum(mean @ w1.astype(jnp.float32).T + fc1_b.astype(jnp.float32), 0.0)
    g = jax.nn.sigmoid(h @ w2.astype(jnp.float32).T + fc2_b.astype(jnp.float32))
    gate = g.reshape(N, C, 1).astype(jnp.float32)

    out3 = pl.pallas_call(
        _se_scale_kernel,
        out_shape=jax.ShapeDtypeStruct((N, C, S), x.dtype),
        grid_spec=pltpu.PrefetchScalarGridSpec(
            num_scalar_prefetch=0,
            grid=(N, n_s),
            in_specs=[pl.BlockSpec((1, C, 1), lambda n, s: (n, 0, 0)),
                      pl.BlockSpec((1, C, TS), lambda n, s: (n, 0, s))],
            out_specs=pl.BlockSpec((1, C, TS), lambda n, s: (n, 0, s)),
        ),
        compiler_params=pltpu.CompilerParams(
            dimension_semantics=("parallel", "parallel"),
            vmem_limit_bytes=vmem_limit),
    )(gate, x3)
    return out3.reshape(N, C, T, H, W)


# ---------------------------------------------------------------------------
# Parameter / reference helpers
# ---------------------------------------------------------------------------
def _round_width(width, multiplier, min_width=8, divisor=8):
    """Matches SE._round_width."""
    if not multiplier:
        return width
    width *= multiplier
    min_width = min_width or divisor
    width_out = max(min_width, int(width + divisor / 2) // divisor * divisor)
    if width_out < 0.9 * width:
        width_out += divisor
    return int(width_out)


def reference_forward(x, fc1_w, fc1_b, fc2_w, fc2_b):
    """Pure-JAX reference mirroring the PyTorch SE module (relu_act=True)."""
    xf = x.astype(jnp.float32)
    pooled = jnp.mean(xf, axis=(2, 3, 4))                              # (N, C)
    h = jnp.maximum(pooled @ fc1_w[:, :, 0, 0, 0].astype(jnp.float32).T
                    + fc1_b.astype(jnp.float32), 0.0)
    g = jax.nn.sigmoid(h @ fc2_w[:, :, 0, 0, 0].astype(jnp.float32).T
                       + fc2_b.astype(jnp.float32))
    return xf * g[:, :, None, None, None]


def _make_params(key, C, dim_fc):
    k1, k2, k3, k4 = jax.random.split(key, 4)
    fc1_w = jax.random.normal(k1, (dim_fc, C, 1, 1, 1), jnp.float32) * 0.2
    fc1_b = jax.random.normal(k2, (dim_fc,), jnp.float32) * 0.1
    fc2_w = jax.random.normal(k3, (C, dim_fc, 1, 1, 1), jnp.float32) * 0.2
    fc2_b = jax.random.normal(k4, (C,), jnp.float32) * 0.1
    return fc1_w, fc1_b, fc2_w, fc2_b


if __name__ == "__main__":
    key = jax.random.PRNGKey(0)
    k_params, kx1, kx2, kx3 = jax.random.split(key, 4)

    C, ratio = 16, 0.25
    dim_fc = _round_width(C, ratio)           # -> 8
    params = _make_params(k_params, C, dim_fc)

    # 1) fused single-pass path (image fits VMEM), f32
    x1 = jax.random.normal(kx1, (2, C, 4, 16, 16), jnp.float32)    # S = 1024
    out1 = jax.block_until_ready(se_forward(x1, *params))
    ref1 = reference_forward(x1, *params)
    assert out1.shape == x1.shape
    assert jnp.allclose(out1, ref1, atol=1e-4, rtol=1e-4), \
        f"fused f32 max err {jnp.max(jnp.abs(out1 - ref1))}"

    # 2) forced two-pass fallback with a ragged spatial size
    #    (exercises the cdiv grid + masked last tile)
    x2 = jax.random.normal(kx2, (2, C, 3, 7, 10), jnp.float32)     # S = 210
    out2 = jax.block_until_ready(se_forward(x2, *params, max_fused_slab_bytes=0))
    ref2 = reference_forward(x2, *params)
    assert jnp.allclose(out2, ref2, atol=1e-4, rtol=1e-4), \
        f"two-pass f32 max err {jnp.max(jnp.abs(out2 - ref2))}"

    # 3) fused path with bf16 activations (f32 accumulation in-kernel)
    x3 = jax.random.normal(kx3, (2, C, 4, 8, 20), jnp.float32)     # S = 640
    out3 = jax.block_until_ready(se_forward(x3.astype(jnp.bfloat16), *params))
    ref3 = reference_forward(x3.astype(jnp.bfloat16), *params)
    assert out3.dtype == jnp.bfloat16
    assert jnp.allclose(out3.astype(jnp.float32), ref3, atol=5e-2, rtol=5e-2), \
        f"fused bf16 max err {jnp.max(jnp.abs(out3.astype(jnp.float32) - ref3))}"

    print("KERNEL_OK")
</pallas_src>

<mosaic_0001>
module attributes {stable_mosaic.version = 11 : i64} {
  func.func @_se_fused_kernel(%arg0: i32, %arg1: memref<1x16x1024xf32, #tpu.memory_space<vmem>>, %arg2: memref<8x16xf32, #tpu.memory_space<vmem>>, %arg3: memref<8x1xf32, #tpu.memory_space<vmem>>, %arg4: memref<16x8xf32, #tpu.memory_space<vmem>>, %arg5: memref<16x1xf32, #tpu.memory_space<vmem>>, %arg6: memref<1x16x1024xf32, #tpu.memory_space<vmem>>) attributes {dimension_semantics = [#tpu.dimension_semantics<parallel>], iteration_bounds = array<i64: 2>, scalar_prefetch = 0 : i64, scratch_operands = 0 : i64, tpu.core_type = #tpu.core_type<tc>, window_params = [{transform_indices = @transform_0, window_bounds = array<i64: 1, 16, 1024>}, {pipeline_mode = #tpu.pipeline_mode<synchronous>, transform_indices = @transform_1, window_bounds = array<i64: 8, 16>}, {pipeline_mode = #tpu.pipeline_mode<synchronous>, transform_indices = @transform_2, window_bounds = array<i64: 8, 1>}, {pipeline_mode = #tpu.pipeline_mode<synchronous>, transform_indices = @transform_3, window_bounds = array<i64: 16, 8>}, {pipeline_mode = #tpu.pipeline_mode<synchronous>, transform_indices = @transform_4, window_bounds = array<i64: 16, 1>}, {transform_indices = @transform_5, window_bounds = array<i64: 1, 16, 1024>}]} {
    %cst = arith.constant 0.000000e+00 : f32
    %0 = vector.broadcast %cst : f32 to vector<16x512xf32>
    %c0_i32 = arith.constant 0 : i32
    %c0_i32_0 = arith.constant 0 : i32
    %c2_i32 = arith.constant 2 : i32
    %1 = arith.addi %c0_i32_0, %c2_i32 : i32
    %c1_i32 = arith.constant 1 : i32
    %2 = scf.for %arg7 = %c0_i32_0 to %1 step %c1_i32 iter_args(%arg8 = %0) -> (vector<16x512xf32>)  : i32 {
      %c512_i32 = arith.constant 512 : i32
      %23 = arith.muli %arg7, %c512_i32 : i32
      %24 = tpu.assume_multiple %23, 512 : i32
      %c0_i32_21 = arith.constant 0 : i32
      %c0_i32_22 = arith.constant 0 : i32
      %25 = tpu.memref_slice %arg1[%c0_i32, %c0_i32_21, %c0_i32_22] : memref<1x16x1024xf32, #tpu.memory_space<vmem>> -> memref<1x16x1024xf32, #tpu.memory_space<vmem>>
      %26 = tpu.memref_squeeze %25 : memref<1x16x1024xf32, #tpu.memory_space<vmem>> -> memref<16x1024xf32, #tpu.memory_space<vmem>>
      %c0_23 = arith.constant 0 : index
      %27 = arith.index_cast %24 : i32 to index
      %28 = vector.load %26[%c0_23, %27] : memref<16x1024xf32, #tpu.memory_space<vmem>>, vector<16x512xf32>
      %29 = arith.addf %arg8, %28 : vector<16x512xf32>
      scf.yield %29 : vector<16x512xf32>
    }
    %c2_i32_1 = arith.constant 2 : i32
    %cst_2 = arith.constant dense<0.000000e+00> : vector<16xf32>
    %3 = vector.multi_reduction <add>, %2, %cst_2 [1] : vector<16x512xf32> to vector<16xf32>
    %4 = vector.shape_cast %3 : vector<16xf32> to vector<16x1xf32>
    %cst_3 = arith.constant 9.765625E-4 : f32
    %5 = vector.broadcast %cst_3 : f32 to vector<16x1xf32>
    %6 = arith.mulf %4, %5 : vector<16x1xf32>
    %c0 = arith.constant 0 : index
    %c0_4 = arith.constant 0 : index
    %7 = vector.load %arg2[%c0, %c0_4] : memref<8x16xf32, #tpu.memory_space<vmem>>, vector<8x16xf32>
    %cst_5 = arith.constant dense<0.000000e+00> : vector<8x1xf32>
    %8 = tpu.matmul %7, %6, %cst_5 {dimension_numbers = #tpu.dot_dimension_numbers<[1], [0], [0], [1], [0, 0, 1, 1], [], []>} : vector<8x16xf32>, vector<16x1xf32>, vector<8x1xf32> -> vector<8x1xf32>
    %c0_6 = arith.constant 0 : index
    %c0_7 = arith.constant 0 : index
    %9 = vector.load %arg3[%c0_6, %c0_7] : memref<8x1xf32, #tpu.memory_space<vmem>>, vector<8x1xf32>
    %10 = arith.addf %8, %9 : vector<8x1xf32>
    %cst_8 = arith.constant 0.000000e+00 : f32
    %11 = vector.broadcast %cst_8 : f32 to vector<8x1xf32>
    %12 = arith.maximumf %10, %11 : vector<8x1xf32>
    %c0_9 = arith.constant 0 : index
    %c0_10 = arith.constant 0 : index
    %13 = vector.load %arg4[%c0_9, %c0_10] : memref<16x8xf32, #tpu.memory_space<vmem>>, vector<16x8xf32>
    %cst_11 = arith.constant dense<0.000000e+00> : vector<16x1xf32>
    %14 = tpu.matmul %13, %12, %cst_11 {dimension_numbers = #tpu.dot_dimension_numbers<[1], [0], [0], [1], [0, 0, 1, 1], [], []>} : vector<16x8xf32>, vector<8x1xf32>, vector<16x1xf32> -> vector<16x1xf32>
    %c0_12 = arith.constant 0 : index
    %c0_13 = arith.constant 0 : index
    %15 = vector.load %arg5[%c0_12, %c0_13] : memref<16x1xf32, #tpu.memory_space<vmem>>, vector<16x1xf32>
    %16 = arith.addf %14, %15 : vector<16x1xf32>
    %17 = arith.negf %16 : vector<16x1xf32>
    %18 = math.exp %17 : vector<16x1xf32>
    %cst_14 = arith.constant 1.000000e+00 : f32
    %19 = vector.broadcast %cst_14 : f32 to vector<16x1xf32>
    %20 = arith.addf %19, %18 : vector<16x1xf32>
    %21 = arith.divf %19, %20 : vector<16x1xf32>
    %c0_i32_15 = arith.constant 0 : i32
    %c0_i32_16 = arith.constant 0 : i32
    %c0_i32_17 = arith.constant 0 : i32
    %c2_i32_18 = arith.constant 2 : i32
    %22 = arith.addi %c0_i32_17, %c2_i32_18 : i32
    %c1_i32_19 = arith.constant 1 : i32
    scf.for %arg7 = %c0_i32_17 to %22 step %c1_i32_19  : i32 {
      %c512_i32 = arith.constant 512 : i32
      %23 = arith.muli %arg7, %c512_i32 : i32
      %24 = tpu.assume_multiple %23, 512 : i32
      %c0_i32_21 = arith.constant 0 : i32
      %c0_i32_22 = arith.constant 0 : i32
      %25 = tpu.memref_slice %arg1[%c0_i32_15, %c0_i32_21, %c0_i32_22] : memref<1x16x1024xf32, #tpu.memory_space<vmem>> -> memref<1x16x1024xf32, #tpu.memory_space<vmem>>
      %26 = tpu.memref_squeeze %25 : memref<1x16x1024xf32, #tpu.memory_space<vmem>> -> memref<16x1024xf32, #tpu.memory_space<vmem>>
      %c0_23 = arith.constant 0 : index
      %27 = arith.index_cast %24 : i32 to index
      %28 = vector.load %26[%c0_23, %27] : memref<16x1024xf32, #tpu.memory_space<vmem>>, vector<16x512xf32>
      %29 = vector.broadcast %21 : vector<16x1xf32> to vector<16x512xf32>
      %30 = arith.mulf %28, %29 : vector<16x512xf32>
      %c0_i32_24 = arith.constant 0 : i32
      %c0_i32_25 = arith.constant 0 : i32
      %31 = tpu.memref_slice %arg6[%c0_i32_16, %c0_i32_24, %c0_i32_25] : memref<1x16x1024xf32, #tpu.memory_space<vmem>> -> memref<1x16x1024xf32, #tpu.memory_space<vmem>>
      %32 = tpu.memref_squeeze %31 : memref<1x16x1024xf32, #tpu.memory_space<vmem>> -> memref<16x1024xf32, #tpu.memory_space<vmem>>
      %c0_26 = arith.constant 0 : index
      %33 = arith.index_cast %24 : i32 to index
      %34 = vector.load %32[%c0_26, %33] : memref<16x1024xf32, #tpu.memory_space<vmem>>, vector<16x512xf32>
      tpu.vector_store %32[%c0_26, %33], %30 {strides = array<i32>} : memref<16x1024xf32, #tpu.memory_space<vmem>>, vector<16x512xf32>,
    }
    %c2_i32_20 = arith.constant 2 : i32
    return
  }
  func.func @transform_0(%arg0: i32) -> (i32, i32, i32) {
    %c0_i32 = arith.constant 0 : i32
    %c0_i32_0 = arith.constant 0 : i32
    %c0_i32_1 = arith.constant 0 : i32
    return %arg0, %c0_i32, %c0_i32_0 : i32, i32, i32
  }
  func.func @transform_1(%arg0: i32) -> (i32, i32) {
    %c0_i32 = arith.constant 0 : i32
    %c0_i32_0 = arith.constant 0 : i32
    %c0_i32_1 = arith.constant 0 : i32
    return %c0_i32, %c0_i32_0 : i32, i32
  }
  func.func @transform_2(%arg0: i32) -> (i32, i32) {
    %c0_i32 = arith.constant 0 : i32
    %c0_i32_0 = arith.constant 0 : i32
    %c0_i32_1 = arith.constant 0 : i32
    return %c0_i32, %c0_i32_0 : i32, i32
  }
  func.func @transform_3(%arg0: i32) -> (i32, i32) {
    %c0_i32 = arith.constant 0 : i32
    %c0_i32_0 = arith.constant 0 : i32
    %c0_i32_1 = arith.constant 0 : i32
    return %c0_i32, %c0_i32_0 : i32, i32
  }
  func.func @transform_4(%arg0: i32) -> (i32, i32) {
    %c0_i32 = arith.constant 0 : i32
    %c0_i32_0 = arith.constant 0 : i32
    %c0_i32_1 = arith.constant 0 : i32
    return %c0_i32, %c0_i32_0 : i32, i32
  }
  func.func @transform_5(%arg0: i32) -> (i32, i32, i32) {
    %c0_i32 = arith.constant 0 : i32
    %c0_i32_0 = arith.constant 0 : i32
    %c0_i32_1 = arith.constant 0 : i32
    return %arg0, %c0_i32, %c0_i32_0 : i32, i32, i32
  }
}

</mosaic_0001>

<bundles_post_ra>
// kernel: tpu_custom_call.1
= control target key start
LH: loop header
LB: loop body
LE: loop exit
PB: predicated region body
PF: predicated region fallthrough
CT: control target
= control target key end

     0   :  { %10 = vsyncpa [#allocation3], 0  ;;  %s1118_s0 = inlined_call_operand.hbm [shape: f32[2,16,1024], index: 0, kind: input, shape index: {}]   ;;  %s1119_s1 = inlined_call_operand.vmem [shape: f32[8,16], index: 1, kind: input, shape index: {}]   ;;  %s1120_s2 = inlined_call_operand.vmem [shape: f32[8,1], index: 2, kind: input, shape index: {}]   ;;  %s1121_s3 = inlined_call_operand.vmem [shape: f32[16,8], index: 3, kind: input, shape index: {}]   ;;  %s1122_s4 = inlined_call_operand.vmem [shape: f32[16,1], index: 4, kind: input, shape index: {}]   ;;  %s1123_s5 = inlined_call_operand.hbm [shape: f32[2,16,1024], index: 5, kind: output, shape index: {}]  }
   0x1   :  { %12 = vsyncpa [#allocation3 + $0x1], 0 }
   0x2   :  { %13 = vsyncpa [#allocation4], 0 }
   0x3   :  { %15 = vsyncpa [#allocation4 + $0x1], 0  ;;  %s947_s18 = smov 0   ;;  %s949_s19 = smov 0  }
   0x4   :  { %s951_s20 = smov 0   ;;  %s953_s21 = smov 0  }
   0x5 LB: > { %s968_s22 = sadd.s32 4294967295, %s870_s21   ;;  %s567_s23 = sadd.s32 4294967294, %s870_s21   ;;  %s870_s21 = sphi %s953_s21, %s1133_s21   ;;  %s866_s20 = sphi %s951_s20, %s1132_s20   ;;  %s862_s19 = sphi %s949_s19, %s1131_s19   ;;  %s858_s18 = sphi %s947_s18, %s1130_s18  }
   0x6   : > { %s972_s24 = sadd.s32 1, %s870_s21   ;;  %s28_s25 = sadd.s32 1, %s866_s20 }
   0x7   : > { %s25_s26 = ssub.s32 %s870_s21, %s972_s24  ;;  %p35_p0 = scmp.ne.s32.totalorder %s866_s20, %s862_s19 }
   0x8   : > { %p26_p1 = scmp.eq.s32.totalorder %s25_s26, 0  ;;  %p36_p2 = scmp.eq.s32.totalorder %s870_s21, 0 }
   0x9   : > { %p41_p3 = scmp.ne.s32.totalorder %s862_s19, %s858_s18  ;;  %p42_p4 = scmp.eq.s32.totalorder %s968_s22, 0 }
   0xa   : > { %s984_s27 = scalar_select %p26_p1, %s866_s20, %s28_s25  }
   0xb   : > { %p986_p5 = por %p36_p2, %p35_p0  ;;  %p990_p6 = por %p42_p4, %p41_p3 }
   0xc   : > { %p149_p7 = scmp.eq.s32.totalorder %s968_s22, 1  ;;  %p155_p8 = scmp.eq.s32.totalorder %s567_s23, 1 }
   0xd   : > { %p606_p10 = scmp.lt.s32.totalorder %s870_s21, 2  ;;  %s187_s7 = sand.u32 1, %s866_s20  }
   0xe   : > { %p997_p11 = por %p149_p7, %p35_p0  ;;  %p1001_p12 = por %p155_p8, %p41_p3 }
   0xf   : > { %s591_s8 = sshll.u32 %s870_s21, 7  ;;  %s570_s9 = sshll.u32 %s187_s7, 7 }
  0x10   : > { %s196_s12 = scalar_lea.hbm %s1118_s0, %s591_s8  ;;  %s191_s14 = scalar_lea.vmem [#allocation2], %s570_s9 }
  0x11   : > { %s197_s13 = sshll.u32 %s196_s12, 4  ;;  %s199_s15 = sshll.u32 %s191_s14, 4  ;;  %s198_s13 = int_to_ptr.hbm [resolvable:$true] %s197_s13  ;;  %s200_s15 = int_to_ptr.vmem [resolvable:$true] %s199_s15 }
  0x12   : > { %p1012_p13 = pnand %p606_p10, %p986_p5  ;;  %p573_p0 = scmp.ge.s32.totalorder %s870_s21, 1 }
  0x13   : > { %p207_p1 = scmp.lt.s32.totalorder %s870_s21, 3  ;;  %s188_s17 = scalar_lea.sflag [#allocation3], %s187_s7 }
  0x14   : > { %s734_s23 = sshra.s32 %s198_s13, 4  ;;  %p738_p3 = pneg %p1012_p13  ;;  %s735_s23 = int_to_ptr.hbm [resolvable:$true] %s734_s23 }
  0x15   : > { %s736_s25 = scalar_lea.hbm %s735_s23, 128  ;;  %s741_s28 = scalar_lea.hbm %s1118_s0, 256 }
  0x16   : > { %p737_p2 = scmp.ne.s32.totalorder %s735_s23, %s736_s25  ;;  %p742_p5 = scmp.lt.s32.totalorder %s735_s23, %s1118_s0 }
  0x17   : > { %p743_p8 = scmp.lt.s32.totalorder %s741_s28, %s736_s25 }
  0x18   : > { %p739_p4 = pnand %p738_p3, %p737_p2 }
  0x19   : > { %p744_p10 = por %p743_p8, %p742_p5 }
  0x1a   : > { %p740_p7 = pneg %p739_p4 }
  0x1c   : > { %p745_p9 = pnand %p744_p10, %p740_p7 }
  0x1e   : > { %748 = shalt.err (!%p745_p9)
}
  0x1f   : > { %s912_s7 = smov 1024   ;;  %s913_s11 = smov 64  }
  0x20   : > { %601 = dma.hbm_to_vmem [thread:$0]  (!%p1012_p13), %s198_s13, 2048, %s200_s15, %s188_s17, %s912_s7, %s912_s7, %s913_s11  }
  0x21   : > { %p208_p2 = pnand %p573_p0, %p207_p1 }
  0x22   : > { %s1033_s12 = sand.u32 (!%p208_p2), 1, %s862_s19  }
  0x23   : > { %211 = sbr.rel (%p208_p2) target bundleno = 612 (0x264), region = 40  ;;  %s574_s14 = sshll.u32 (!%p208_p2), %s1033_s12, 7 }
  0x24   : > { %s214_s23 = scalar_lea.sflag (!%p208_p2), [#allocation3], %s1033_s12  ;;  %s1037_s25 = scalar_lea.vmem (!%p208_p2), [#allocation2], %s574_s14 }
  0x28   : > { %849 = dma.done.wait (%p990_p6), %s214_s23, 2048  }
  0x29   : > { %851 = vsyncadd (%p990_p6), %s214_s23, 4294965248  ;;  %s1043_s13 = scalar_lea.vmem [#allocation5], %s574_s14  ;;  %v872_v0 = vmov 0.0   ;;  %v876_v1 = vmov 0.0   ;;  %v880_v2 = vmov 0.0   ;;  %v884_v3 = vmov 0.0  }
  0x2a   : > { %v888_v4 = vmov 0.0   ;;  %v892_v5 = vmov 0.0   ;;  %v896_v6 = vmov 0.0   ;;  %v900_v7 = vmov 0.0   ;;  %s1045_s15 = smov 0  }
  0x2b LB: >> { %s576_s29 = sshll.u32 %s906_s15, 9  ;;  %s250_s15 = sadd.s32 1, %s906_s15   ;;  %s906_s15 = sphi %s1045_s15, %s250_s15   ;;  %v902_v7 = vphi %v900_v7, %v901_v7   ;;  %v898_v6 = vphi %v896_v6, %v897_v6   ;;  %v894_v5 = vphi %v892_v5, %v893_v5   ;;  %v890_v4 = vphi %v888_v4, %v889_v4   ;;  %v886_v3 = vphi %v884_v3, %v885_v3   ;;  %v882_v2 = vphi %v880_v2, %v881_v2   ;;  %v878_v1 = vphi %v876_v1, %v877_v1   ;;  %v874_v0 = vphi %v872_v0, %v873_v0  }
  0x2c   : >> { %s260_s16 = sshra.s32 %s576_s29, 7  ;;  %p247_p6 = scmp.ge.s32.totalorder %s250_s15, 2  }
  0x2d   : >> { %s577_s17 = sshll.u32 %s260_s16, 3  ;;  %v292_v34 = vld [vmem:[%s1119_s1] sm:$0xff] (%p247_p6)  ;;  %vm294_vm0 = vcmask (%p247_p6), 130048   ;;  %vm323_vm1 = vcmask (%p247_p6), 64512   ;;  %v320_v40 = vld [vmem:[%s1121_s3 + $0x8] sm:$0xff] (%p247_p6) }
  0x2e   : >> { %s263_s26 = scalar_lea.vmem %s1037_s25, %s577_s17 [#allocation2]  ;;  %v293_v35 = vld [vmem:[%s1120_s2] sm:$0xff] (%p247_p6)  ;;  %v322_v45 = vld [vmem:[%s1122_s4 + $0x8] sm:$0xff] (%p247_p6) }
  0x2f   : >> { %v264_v8 = vld [vmem:[%s263_s26] sm:$0xff]  ;;  %v265_v9 = vld [vmem:[%s263_s26 + $0x8] sm:$0xff]  ;;  %v266_v10 = vld [vmem:[%s263_s26 + $0x10] sm:$0xff] }
  0x30   : >> { %v267_v11 = vld [vmem:[%s263_s26 + $0x18] sm:$0xff]  ;;  %v268_v12 = vld [vmem:[%s263_s26 + $0x40] sm:$0xff]  ;;  %v269_v13 = vld [vmem:[%s263_s26 + $0x48] sm:$0xff]  ;;  %v272_v14 = vadd.f32 %v902_v7, %v264_v8   ;;  %v273_v15 = vadd.f32 %v898_v6, %v265_v9   ;;  %v274_v16 = vadd.f32 %v894_v5, %v266_v10   ;;  %249 = sbr.rel (!%p247_p6) target bundleno = 43 (0x2b), region = 102 }
  0x31   : >> { %v270_v17 = vld [vmem:[%s263_s26 + $0x50] sm:$0xff]  ;;  %v271_v18 = vld [vmem:[%s263_s26 + $0x58] sm:$0xff]  ;;  %v275_v19 = vadd.f32 %v890_v4, %v267_v11   ;;  %v276_v20 = vadd.f32 %v886_v3, %v268_v12   ;;  %v277_v21 = vadd.f32 %v882_v2, %v269_v13   ;;  %v319_v39 = vld [vmem:[%s1121_s3] sm:$0xff] (%p247_p6)  ;;  %s1073_s26 = smov (%p247_p6), 0  }
  0x32   : >> { %v278_v22 = vadd.f32 %v878_v1, %v270_v17   ;;  %v279_v23 = vadd.f32 %v874_v0, %v271_v18   ;;  %v893_v5 = vmov %v274_v16   ;;  %v897_v6 = vmov %v273_v15   ;;  %v321_v41 = vld [vmem:[%s1122_s4] sm:$0xff] (%p247_p6) }
  0x33   : >> { %v881_v2 = vmov %v277_v21   ;;  %v885_v3 = vmov %v276_v20   ;;  %v889_v4 = vmov %v275_v19   ;;  %v901_v7 = vmov %v272_v14  }
  0x34   : >> { %v873_v0 = vmov %v279_v23   ;;  %v877_v1 = vmov %v278_v22   ;;  %v285_v24 = vadd.f32 (%p247_p6), %v277_v21, %v276_v20  ;;  %v280_v26 = vadd.f32 (%p247_p6), %v273_v15, %v272_v14 }
  0x36   : > { %v286_v25 = vadd.f32 %v285_v24, %v278_v22  ;;  %v281_v28 = vadd.f32 %v280_v26, %v274_v16 }
  0x38   : > { %v287_v27 = vadd.f32 %v286_v25, %v279_v23  ;;  %v282_v29 = vadd.f32 %v281_v28, %v275_v19 }
  0x3a   : > { %288 = vadd.xlane.f32.xlu0 %v287_v27 }
  0x42   : > { %283 = vadd.xlane.f32.xlu0 %v282_v29 }
  0xad   : > { %v289_v30 = vpop.xlane.xlu0 %288 }
  0xae   : > { %v291_v31 = vmul.f32 0.0009765625, %v289_v30 }
  0xb0   : > { %312 = vmatpush.msra.mxu0 %v291_v31 }
  0xb5   : > { %v284_v32 = vpop.xlane.xlu0 %283 }
  0xb6   : > { %v290_v33 = vmul.f32 0.0009765625, %v284_v32 }
  0xb8   : > { %313 = vmatpush.msra.mxu0 %v290_v33 }
  0xb9   : > { %578 = vmatmul.msk.f32.vlgmr.msra.gmra.mxu0 %vm294_vm0, %v292_v34 }
 0x136   : > { %v315_v36 = vpop.f32.mrf.mxu0 }
 0x137   : > { %v316_v37 = vadd.f32 %v315_v36, %v293_v35 }
 0x139   : > { %v318_v38 = vmax.f32 %v316_v37, 0.0 }
 0x13b   : > { %345 = vmatpush.msra.mxu1 %v318_v38  ;;  %593 = vmatpush.msra.mxu2 %v318_v38 }
 0x13c   : > { %579 = vmatmul.msk.f32.vlgmr.msra.gmra.mxu1 %vm323_vm1, %v319_v39  ;;  %580 = vmatmul.msk.f32.vlgmr.msra.gmra.mxu2 %vm323_vm1, %v320_v40 }
 0x1b9   : > { %v347_v42 = vpop.f32.mrf.mxu1 }
 0x1ba   : > { %v348_v43 = vadd.f32 %v347_v42, %v321_v41 }
 0x1bc   : > { %v581_v44 = vmul.f32 -1.442695, %v348_v43 }
 0x1be   : > { %725 = vpow2.f32 %v581_v44 }
 0x1bf   : > { %v350_v46 = vpop.f32.mrf.mxu2 }
 0x1c0   : > { %v351_v47 = vadd.f32 %v350_v46, %v322_v45 }
 0x1c2   : > { %v582_v48 = vmul.f32 -1.442695, %v351_v47 }
 0x1c4   : > { %v726_v49 = vpop.eup %725  ;;  %727 = vpow2.f32 %v582_v48 }
 0x1c5   : > { %v359_v50 = vadd.f32 1.0, %v726_v49 }
 0x1c7   : > { %729 = vrcp.f32 %v359_v50  ;;  %v372_v56 = vand.u32 2147483648, %v359_v50  ;;  %vm366_vm2 = vweird.f32 %v359_v50  ;;  %v370_v58 = vand.u32 2147483647, %v359_v50 }
 0x1c9   : > { %v373_v62 = vor.u32 1.1754944e-38, %v372_v56  ;;  %vm371_vm5 = vcmp.eq.f32.partialorder %v370_v58, 8.507059e+37 }
 0x1ca   : > { %v728_v51 = vpop.eup %727 }
 0x1cb   : > { %v360_v52 = vadd.f32 1.0, %v728_v51 }
 0x1cd   : > { %v730_v53 = vpop.eup %729  ;;  %731 = vrcp.f32 %v360_v52  ;;  %v387_v2 = vand.u32 2147483648, %v360_v52  ;;  %v385_v4 = vand.u32 2147483647, %v360_v52  ;;  %vm381_vm7 = vweird.f32 %v360_v52 }
 0x1ce   : > { %v362_v54 = vmul.f32 %v730_v53, %v359_v50  ;;  %vm367_vm3 = vweird.f32 %v730_v53 }
 0x1cf   : > { %vm368_vm4 = vmor %vm366_vm2, %vm367_vm3  ;;  %v388_v6 = vor.u32 1.1754944e-38, %v387_v2  ;;  %vm386_vm9 = vcmp.eq.f32.partialorder %v385_v4, 8.507059e+37 }
 0x1d0   : > { %v363_v55 = vsub.f32 1.0, %v362_v54 }
 0x1d2   : > { %v364_v57 = vmul.f32 %v730_v53, %v363_v55 }
 0x1d3   : > { %v732_v59 = vpop.eup %731 }
 0x1d4   : > { %v365_v60 = vadd.f32 %v730_v53, %v364_v57  ;;  %v377_v61 = vmul.f32 %v732_v59, %v360_v52  ;;  %vm382_vm6 = vweird.f32 %v732_v59 }
 0x1d5   : > { %vm383_vm8 = vmor %vm381_vm7, %vm382_vm6 }
 0x1d6   : > { %v369_v63 = vsel %vm368_vm4, %v730_v53, %v365_v60  ;;  %v378_v0 = vsub.f32 1.0, %v377_v61 }
 0x1d7   : > { %v374_v1 = vsel %vm371_vm5, %v373_v62, %v369_v63 }
 0x1d8   : > { %v379_v3 = vmul.f32 %v732_v59, %v378_v0 }
 0x1da   : > { %v380_v5 = vadd.f32 %v732_v59, %v379_v3 }
 0x1dc   : > { %v384_v7 = vsel %vm383_vm8, %v732_v59, %v380_v5 }
 0x1dd   : > { %v389_v8 = vsel %vm386_vm9, %v388_v6, %v384_v7 }
 0x1de LB: >> { %v914_v9 = vmov 0   ;;  %s583_s8 = sshll.u32 %s910_s26, 9  ;;  %s396_s26 = sadd.s32 1, %s910_s26   ;;  %s910_s26 = sphi %s1073_s26, %s396_s26  }
 0x1df   : >> { %733 = vset.pattern.permute.xlu0 %v914_v9  ;;  %s398_s28 = sshra.s32 %s583_s8, 7  ;;  %p393_p9 = scmp.ge.s32.totalorder %s396_s26, 2  }
 0x1e0   : >> { %412 = vperm.xlu0 %733, %v374_v1   ;;  %s584_s9 = sshll.u32 %s398_s28, 3  ;;  %s592_s11 = sshll.u32 (%p393_p9), %s968_s22, 7 }
 0x1e1   : >> { %s401_s10 = scalar_lea.vmem %s1037_s25, %s584_s9 [#allocation2]  ;;  %s429_s7 = scalar_lea.vmem %s1043_s13, %s584_s9 [#allocation5] }
 0x1e2   : >> { %v402_v10 = vld [vmem:[%s401_s10] sm:$0xff]  ;;  %v403_v11 = vld [vmem:[%s401_s10 + $0x8] sm:$0xff]  ;;  %v404_v12 = vld [vmem:[%s401_s10 + $0x10] sm:$0xff]  ;;  %s450_s15 = scalar_lea.hbm (%p393_p9), %s1123_s5, %s592_s11  ;;  %s451_s29 = sshll.u32 (%p393_p9), %s1043_s13, 4  ;;  %s452_s29 = int_to_ptr.vmem [resolvable:$true] %s451_s29 }
 0x1e3   : >> { %v405_v13 = vld [vmem:[%s401_s10 + $0x18] sm:$0xff]  ;;  %v406_v19 = vld [vmem:[%s401_s10 + $0x40] sm:$0xff]  ;;  %v407_v20 = vld [vmem:[%s401_s10 + $0x48] sm:$0xff]  ;;  %s453_s16 = sshll.u32 (%p393_p9), %s450_s15, 4  ;;  %s439_s17 = scalar_lea.sflag (%p393_p9), [#allocation4], %s1033_s12  ;;  %s454_s16 = int_to_ptr.hbm [resolvable:$true] %s453_s16 }
 0x1e4   : >> { %v408_v21 = vld [vmem:[%s401_s10 + $0x50] sm:$0xff]  ;;  %v409_v22 = vld [vmem:[%s401_s10 + $0x58] sm:$0xff]  ;;  %s778_s8 = sshra.s32 (%p393_p9), %s454_s16, 4  ;;  %s784_s22 = scalar_lea.hbm (%p393_p9), %s1123_s5, 256  ;;  %s779_s8 = int_to_ptr.hbm [resolvable:$true] %s778_s8 }
 0x1e5   : > { %s780_s28 = scalar_lea.hbm (%p393_p9), %s779_s8, 128  ;;  %p785_p3 = scmp.lt.s32.totalorder (%p393_p9), %s779_s8, %s1123_s5 }
 0x1e6   : > { %p781_p13 = scmp.ne.s32.totalorder (%p393_p9), %s779_s8, %s780_s28  ;;  %p786_p4 = scmp.lt.s32.totalorder (%p393_p9), %s784_s22, %s780_s28 }
 0x1e8   : >> { %417 = vperm.xlu0 %733, %v389_v8   ;;  %p782_p0 = pnand (%p393_p9), %p781_p13, %p997_p11  ;;  %p787_p7 = por (%p393_p9), %p786_p4, %p785_p3 }
 0x1ea   : > { %p783_p1 = pneg (%p393_p9), %p782_p0 }
 0x1ec   : > { %p788_p5 = pnand (%p393_p9), %p787_p7, %p783_p1 }
 0x252   : >> { %v413_v14 = vpop.permute.xlu0 %412 }
 0x253   : >> { %v420_v15 = vmul.f32 %v413_v14, %v402_v10  ;;  %v421_v16 = vmul.f32 %v413_v14, %v403_v11  ;;  %v422_v17 = vmul.f32 %v413_v14, %v404_v12  ;;  %v423_v18 = vmul.f32 %v413_v14, %v405_v13 }
 0x255   : >> { %430 = vst [vmem:[%s429_s7] sm:$0xff] %v420_v15 }
 0x256   : >> { %431 = vst [vmem:[%s429_s7 + $0x8] sm:$0xff] %v421_v16 }
 0x257   : >> { %432 = vst [vmem:[%s429_s7 + $0x10] sm:$0xff] %v422_v17 }
 0x258   : >> { %433 = vst [vmem:[%s429_s7 + $0x18] sm:$0xff] %v423_v18 }
 0x25a   : >> { %v418_v23 = vpop.permute.xlu0 %417 }
 0x25b   : >> { %v424_v24 = vmul.f32 %v418_v23, %v406_v19  ;;  %v425_v25 = vmul.f32 %v418_v23, %v407_v20  ;;  %v426_v26 = vmul.f32 %v418_v23, %v408_v21  ;;  %v427_v27 = vmul.f32 %v418_v23, %v409_v22 }
 0x25c   : > { %395 = sbr.rel (!%p393_p9) target bundleno = 478 (0x1de), region = 113 }
 0x25d   : >> { %434 = vst [vmem:[%s429_s7 + $0x40] sm:$0xff] %v424_v24 }
 0x25e   : >> { %435 = vst [vmem:[%s429_s7 + $0x48] sm:$0xff] %v425_v25 }
 0x25f   : >> { %436 = vst [vmem:[%s429_s7 + $0x50] sm:$0xff] %v426_v26 }
 0x260   : >> { %437 = vst [vmem:[%s429_s7 + $0x58] sm:$0xff] %v427_v27 }
 0x261   : > { %791 = shalt.err (!%p788_p5)
}
 0x262   : > { %s915_s12 = smov 1024   ;;  %s916_s13 = smov 64  }
 0x263   : > { %596 = dma.vmem_to_hbm [thread:$0]  (%p997_p11), %s452_s29, 2048, %s454_s16, %s439_s17, %s915_s12, %s915_s12, %s916_s13  }
 0x264 PF: > { %s468_s7 = sand.u32 1, %s858_s18   ;;  %p1129_p8 = scmp.ge.s32.totalorder %s870_s21, 2 }
 0x265   : > { %s469_s11 = scalar_lea.sflag [#allocation4], %s468_s7 }
 0x266   : > { %p603_p10 = pnand %p1129_p8, %p1001_p12 }
 0x268   : > { %p604_p2 = pneg %p603_p10 }
 0x26a   : > { %853 = dma.done.wait (%p604_p2), %s469_s11, 2048  }
 0x26b   : > { %855 = vsyncadd (%p604_p2), %s469_s11, 4294965248  ;;  %p18_p6 = scmp.ge.s32.totalorder %s972_s24, 4   ;;  %s1130_s18 = smov %s862_s19 }
 0x26c   : > { %s1131_s19 = smov %s866_s20  ;;  %s1132_s20 = smov %s984_s27 }
 0x26d   : > { %s1133_s21 = smov %s972_s24  ;;  %20 = sbr.rel (!%p18_p6) target bundleno = 5 (0x5), region = 124 }
 0x272   :  { %475 = vsyncpa [#allocation3], 1 }
 0x273   :  { %477 = vsyncpa [#allocation3 + $0x1], 1 }
 0x274   :  { %478 = vsyncpa [#allocation4], 1 }
 0x275   :  { %480 = vsyncpa [#allocation4 + $0x1], 1 }

</bundles_post_ra>
